<compile_context>
chip_gen: v5e
topology: v5e:2x2
jax: 0.10.0
libtpu: 0.0.40
codegen_flags: <defaults>
</compile_context>

<pallas_src>
import jax
import jax.numpy as jnp
from jax import lax
from jax.experimental import pallas as pl
from jax.experimental.pallas import tpu as pltpu

LN_EPS = 1e-5  # nn.LayerNorm default
_MIB = 1024 * 1024


def _round_up(n, m):
    return ((n + m - 1) // m) * m


def _footprint_bytes(tm, ti, hidden, cdt_bytes, out_bytes):
    """Approximate per-grid-step VMEM footprint for the kernel below."""
    return (tm * hidden * (2 * cdt_bytes + 2 * out_bytes + 4)   # x (2-buf), out (2-buf), f32 acc
            + tm * ti * 4                                       # fc1 activation (f32) live temp
            + 2 * hidden * ti * cdt_bytes * 2                   # W1 + W2 chunks, double-buffered
            + 2 * ti * 4                                        # b1 chunk, double-buffered
            + 6 * hidden * 4)                                   # b2 / gamma / beta, double-buffered


def _select_tiles(M, hidden, inter, cdt_bytes, out_bytes, budget, tm_align):
    """Pick (tile_m, tile_i) from the VMEM budget. Prefer resident weights; when
    chunking, shrink tile_i before tile_m (weight HBM traffic ~ M_p / tile_m)."""
    fp = lambda t, ti: _footprint_bytes(t, ti, hidden, cdt_bytes, out_bytes)

    # Row-tile candidates, largest first; cap at ceil(M/2) so the parallel row
    # axis has >= 2 steps (megacore) whenever M allows more than one tile.
    tm_hi = min(2048, _round_up(max((M + 1) // 2, tm_align), tm_align))
    cands = [tm_hi] + [t for t in (2048, 1024, 512, 256, 128, 64, 32, 16, 8)
                       if t % tm_align == 0 and t < tm_hi]

    # 1) Resident weights: ti = inter -> single reduction step, W1/W2 DMA'd once.
    min_res_tm = min(128, tm_hi)
    for t in cands:
        if t < min_res_tm:
            break
        if fp(t, inter) <= budget:
            return t, inter

    # 2) Chunked: keep tm as large as possible, shrink ti first.
    ti_cands = [t for t in (512, 256, 128) if t < inter]
    if not ti_cands:
        return cands[-1], inter
    for t in cands:
        for ti in ti_cands:
            if fp(t, ti) <= budget:
                return t, ti
    return cands[-1], ti_cands[-1]  # best effort; vmem_limit is raised to cover it


def ffn_kernel(x_ref, w1_ref, b1_ref, w2_ref, b2_ref, g_ref, be_ref, o_ref, acc_ref):
    # x_ref:  (TM, H)  compute dtype      w1_ref: (H, TI)  compute dtype
    # b1_ref: (1, TI)  f32                w2_ref: (TI, H)  compute dtype
    # b2/g/be: (1, H)  f32                o_ref:  (TM, H)  out dtype
    # acc_ref: (TM, H) f32 scratch (fc2 partial-product accumulator)
    j = pl.program_id(1)

    # fc1 (one inter-chunk) + bias + ReLU. Operands stay in their stored dtype
    # (bf16 feeds the fast MXU path directly); accumulation is f32.
    h = jnp.dot(x_ref[...], w1_ref[...], preferred_element_type=jnp.float32)
    h = jnp.maximum(h + b1_ref[...], 0.0)

    # fc2 partial product for this inter-chunk (f32 accumulation on the MXU).
    partial = jnp.dot(h.astype(w2_ref.dtype), w2_ref[...],
                      preferred_element_type=jnp.float32)

    # First chunk writes the partial directly (no zero-init + read-modify-write);
    # later chunks accumulate.
    @pl.when(j == 0)
    def _():
        acc_ref[...] = partial

    @pl.when(j > 0)
    def _():
        acc_ref[...] += partial

    # dropout: inference mode -> identity.
    # TODO(synk): training-mode dropout (pltpu.prng_random_bits mask) not emitted.

    @pl.when(j == pl.num_programs(1) - 1)
    def _():
        out = acc_ref[...] + b2_ref[...] + x_ref[...].astype(jnp.float32)
        mean = jnp.mean(out, axis=-1, keepdims=True)
        cen = out - mean
        var = jnp.mean(cen * cen, axis=-1, keepdims=True)
        norm = cen * lax.rsqrt(var + LN_EPS)
        o_ref[...] = (norm * g_ref[...] + be_ref[...]).astype(o_ref.dtype)


def feed_forward(hidden_states, w1, b1, w2, b2, gamma, beta, *,
                 tile_m=None, tile_i=None, compute_dtype=None):
    """hidden_states: [bs, seq_len, hidden]. Weights already stored [in, out]."""
    assert hidden_states.ndim == 3
    bs, seq_len, hidden = hidden_states.shape
    inter = w1.shape[1]
    M = bs * seq_len

    cdt = jnp.dtype(compute_dtype) if compute_dtype is not None \
        else jnp.dtype(hidden_states.dtype)
    out_dtype = jnp.dtype(hidden_states.dtype)
    cdt_bytes = cdt.itemsize
    out_bytes = out_dtype.itemsize

    # Sublane alignment for the row tile: 8 rows for 4-byte, 16 for 2-byte (bf16
    # packs two rows per sublane), 32 for 1-byte dtypes.
    tm_align = {4: 8, 2: 16, 1: 32}.get(cdt_bytes, 8)

    # Generation-aware VMEM budget + limit.
    try:
        vmem_cap = int(pltpu.get_tpu_info().vmem_capacity_bytes)
    except Exception:
        vmem_cap = 64 * _MIB  # conservative (v7x-class) if the query is unavailable
    budget = 40 * _MIB if vmem_cap <= 80 * _MIB else 96 * _MIB

    # Tile selection (only where the caller did not pin a value).
    if tile_m is None or tile_i is None:
        auto_tm, auto_ti = _select_tiles(M, hidden, inter, cdt_bytes, out_bytes,
                                         budget, tm_align)
    tm = int(tile_m) if tile_m is not None else auto_tm
    ti_req = int(tile_i) if tile_i is not None else auto_ti

    tm = min(tm, _round_up(M, tm_align))
    tm = _round_up(tm, tm_align)
    M_p = _round_up(M, tm)

    if ti_req >= inter:
        ti, inter_p = inter, inter              # resident weights: single reduction step
    else:
        assert ti_req % 128 == 0, "tile_i must be a multiple of 128 when chunking"
        ti = ti_req
        inter_p = _round_up(inter, ti)

    n_i = M_p // tm
    n_j = inter_p // ti

    need = _footprint_bytes(tm, ti, hidden, cdt_bytes, out_bytes)
    vmem_limit = int(min(vmem_cap - 4 * _MIB, max(budget + 12 * _MIB, need + 8 * _MIB)))
    # Under VMEM pressure on a chunked grid, single-buffer the output block: it is
    # only written on the last reduction step, so the writeback stall is negligible.
    tight = (n_j > 1) and (need > int(0.85 * budget))

    # Matmul operands in compute dtype; bias / LN params in f32.
    x2d = hidden_states.reshape(M, hidden).astype(cdt)
    w1c = w1.astype(cdt)
    w2c = w2.astype(cdt)
    b1c = b1.reshape(1, inter).astype(jnp.float32)
    b2c = b2.reshape(1, hidden).astype(jnp.float32)
    g2d = gamma.reshape(1, hidden).astype(jnp.float32)
    be2d = beta.reshape(1, hidden).astype(jnp.float32)

    if M_p != M:
        x2d = jnp.pad(x2d, ((0, M_p - M), (0, 0)))
    if inter_p != inter:
        # Zero-padded W1 cols / b1 / W2 rows contribute exactly 0 to the output.
        w1c = jnp.pad(w1c, ((0, 0), (0, inter_p - inter)))
        b1c = jnp.pad(b1c, ((0, 0), (0, inter_p - inter)))
        w2c = jnp.pad(w2c, ((0, inter_p - inter), (0, 0)))

    grid = (n_i, n_j)

    # Weights (and b1) are re-streamed once per row tile only when chunked.
    w_stream = n_i if n_j > 1 else 1
    cost = pl.CostEstimate(
        flops=4 * M_p * hidden * inter_p,
        transcendentals=M_p,
        bytes_accessed=int(M_p * hidden * cdt_bytes                       # x
                           + M_p * hidden * out_bytes                     # out
                           + (2 * hidden * inter_p * cdt_bytes
                              + inter_p * 4) * w_stream                   # W1 + W2 + b1
                           + 3 * hidden * 4),                             # b2 / gamma / beta
    )

    if tight:
        out_spec = pl.BlockSpec((tm, hidden), lambda i, j: (i, 0),
                                pipeline_mode=pl.Buffered(1))
    else:
        out_spec = pl.BlockSpec((tm, hidden), lambda i, j: (i, 0))

    out2d = pl.pallas_call(
        ffn_kernel,
        out_shape=jax.ShapeDtypeStruct((M_p, hidden), out_dtype),
        grid_spec=pltpu.PrefetchScalarGridSpec(
            num_scalar_prefetch=0,
            grid=grid,
            in_specs=[
                pl.BlockSpec((tm, hidden), lambda i, j: (i, 0)),   # x row tile
                pl.BlockSpec((hidden, ti), lambda i, j: (0, j)),   # W1 inter-chunk
                pl.BlockSpec((1, ti), lambda i, j: (0, j)),        # b1 inter-chunk
                pl.BlockSpec((ti, hidden), lambda i, j: (j, 0)),   # W2 inter-chunk
                pl.BlockSpec((1, hidden), lambda i, j: (0, 0)),    # b2
                pl.BlockSpec((1, hidden), lambda i, j: (0, 0)),    # gamma
                pl.BlockSpec((1, hidden), lambda i, j: (0, 0)),    # beta
            ],
            out_specs=out_spec,
            scratch_shapes=[pltpu.VMEM((tm, hidden), jnp.float32)],
        ),
        compiler_params=pltpu.CompilerParams(
            dimension_semantics=("parallel", "arbitrary"),
            vmem_limit_bytes=vmem_limit,
        ),
        cost_estimate=cost,
    )(x2d, w1c, b1c, w2c, b2c, g2d, be2d)

    return out2d[:M].reshape(bs, seq_len, hidden)


def _reference(hidden_states, w1, b1, w2, b2, gamma, beta):
    x = hidden_states.astype(jnp.float32)
    h = jnp.maximum(x @ w1.astype(jnp.float32) + b1, 0.0)
    y = h @ w2.astype(jnp.float32) + b2
    out = y + x
    mean = out.mean(-1, keepdims=True)
    var = ((out - mean) ** 2).mean(-1, keepdims=True)
    return (out - mean) / jnp.sqrt(var + LN_EPS) * gamma + beta


if __name__ == "__main__":
    key = jax.random.PRNGKey(0)
    ks = jax.random.split(key, 10)

    # ---- Check 1: tiny f32 shapes (bs=2, seq=8, hidden=32, inter=64), tight tol.
    # Auto-tiling: resident weights, tm=8 -> grid=(2, 1) (>=2 row tiles for megacore).
    bs, seq_len, hidden, inter = 2, 8, 32, 64
    x = jax.random.normal(ks[0], (bs, seq_len, hidden), dtype=jnp.float32)
    w1 = jax.random.normal(ks[1], (hidden, inter), dtype=jnp.float32) * (1.0 / hidden ** 0.5)
    b1 = jax.random.normal(ks[2], (inter,), dtype=jnp.float32) * 0.01
    w2 = jax.random.normal(ks[3], (inter, hidden), dtype=jnp.float32) * (1.0 / inter ** 0.5)
    b2 = jax.random.normal(ks[4], (hidden,), dtype=jnp.float32) * 0.01
    gamma = jnp.ones((hidden,), dtype=jnp.float32)
    beta = jnp.zeros((hidden,), dtype=jnp.float32)

    out = jax.block_until_ready(feed_forward(x, w1, b1, w2, b2, gamma, beta))
    ref = _reference(x, w1, b1, w2, b2, gamma, beta)
    assert out.shape == (bs, seq_len, hidden)
    assert jnp.allclose(out, ref, atol=1e-4, rtol=1e-4), "f32 mismatch vs reference"

    # ---- Check 2: bf16 path, row padding (M=400 -> 512) and explicit chunked
    # 2-D (row x inter) grid exercising the accumulator / last-chunk epilogue.
    bs, seq_len, hidden, inter = 2, 200, 128, 256
    x = jax.random.normal(ks[5], (bs, seq_len, hidden), dtype=jnp.float32).astype(jnp.bfloat16)
    w1 = (jax.random.normal(ks[6], (hidden, inter), dtype=jnp.float32)
          * (1.0 / hidden ** 0.5)).astype(jnp.bfloat16)
    b1 = jax.random.normal(ks[7], (inter,), dtype=jnp.float32) * 0.01
    w2 = (jax.random.normal(ks[8], (inter, hidden), dtype=jnp.float32)
          * (1.0 / inter ** 0.5)).astype(jnp.bfloat16)
    b2 = jax.random.normal(ks[9], (hidden,), dtype=jnp.float32) * 0.01
    gamma = jnp.ones((hidden,), dtype=jnp.float32)
    beta = jnp.zeros((hidden,), dtype=jnp.float32)

    out = jax.block_until_ready(
        feed_forward(x, w1, b1, w2, b2, gamma, beta, tile_m=128, tile_i=128))
    ref = _reference(x, w1, b1, w2, b2, gamma, beta)
    assert out.shape == (bs, seq_len, hidden)
    assert jnp.allclose(out.astype(jnp.float32), ref, atol=5e-2, rtol=5e-2), \
        "bf16 mismatch vs reference"

    # ---- Check 3: bf16 auto-tiling path (resident weights picked from the budget).
    out = jax.block_until_ready(feed_forward(x, w1, b1, w2, b2, gamma, beta))
    assert jnp.allclose(out.astype(jnp.float32), ref, atol=5e-2, rtol=5e-2), \
        "bf16 auto-tile mismatch vs reference"

    print("KERNEL_OK")
</pallas_src>

<mosaic_0001>
module attributes {stable_mosaic.version = 11 : i64} {
  func.func @ffn_kernel(%arg0: i32, %arg1: i32, %arg2: memref<8x32xf32, #tpu.memory_space<vmem>>, %arg3: memref<32x64xf32, #tpu.memory_space<vmem>>, %arg4: memref<1x64xf32, #tpu.memory_space<vmem>>, %arg5: memref<64x32xf32, #tpu.memory_space<vmem>>, %arg6: memref<1x32xf32, #tpu.memory_space<vmem>>, %arg7: memref<1x32xf32, #tpu.memory_space<vmem>>, %arg8: memref<1x32xf32, #tpu.memory_space<vmem>>, %arg9: memref<8x32xf32, #tpu.memory_space<vmem>>, %arg10: memref<8x32xf32, #tpu.memory_space<vmem>>) attributes {dimension_semantics = [#tpu.dimension_semantics<parallel>, #tpu.dimension_semantics<arbitrary>], iteration_bounds = array<i64: 2, 1>, scalar_prefetch = 0 : i64, scratch_operands = 1 : i64, tpu.core_type = #tpu.core_type<tc>, window_params = [{transform_indices = @transform_0, window_bounds = array<i64: 8, 32>}, {transform_indices = @transform_1, window_bounds = array<i64: 32, 64>}, {transform_indices = @transform_2, window_bounds = array<i64: 1, 64>}, {transform_indices = @transform_3, window_bounds = array<i64: 64, 32>}, {pipeline_mode = #tpu.pipeline_mode<synchronous>, transform_indices = @transform_4, window_bounds = array<i64: 1, 32>}, {pipeline_mode = #tpu.pipeline_mode<synchronous>, transform_indices = @transform_5, window_bounds = array<i64: 1, 32>}, {pipeline_mode = #tpu.pipeline_mode<synchronous>, transform_indices = @transform_6, window_bounds = array<i64: 1, 32>}, {transform_indices = @transform_7, window_bounds = array<i64: 8, 32>}]} {
    %c0 = arith.constant 0 : index
    %c0_0 = arith.constant 0 : index
    %0 = vector.load %arg2[%c0, %c0_0] : memref<8x32xf32, #tpu.memory_space<vmem>>, vector<8x32xf32>
    %c0_1 = arith.constant 0 : index
    %c0_2 = arith.constant 0 : index
    %1 = vector.load %arg3[%c0_1, %c0_2] : memref<32x64xf32, #tpu.memory_space<vmem>>, vector<32x64xf32>
    %cst = arith.constant dense<0.000000e+00> : vector<8x64xf32>
    %2 = tpu.matmul %0, %1, %cst {dimension_numbers = #tpu.dot_dimension_numbers<[1], [0], [0], [1], [0, 0, 1, 1], [], []>} : vector<8x32xf32>, vector<32x64xf32>, vector<8x64xf32> -> vector<8x64xf32>
    %c0_3 = arith.constant 0 : index
    %c0_4 = arith.constant 0 : index
    %3 = vector.load %arg4[%c0_3, %c0_4] : memref<1x64xf32, #tpu.memory_space<vmem>>, vector<1x64xf32>
    %4 = vector.broadcast %3 : vector<1x64xf32> to vector<8x64xf32>
    %5 = arith.addf %2, %4 : vector<8x64xf32>
    %cst_5 = arith.constant 0.000000e+00 : f32
    %6 = vector.broadcast %cst_5 : f32 to vector<8x64xf32>
    %7 = arith.maximumf %5, %6 : vector<8x64xf32>
    %c0_6 = arith.constant 0 : index
    %c0_7 = arith.constant 0 : index
    %8 = vector.load %arg5[%c0_6, %c0_7] : memref<64x32xf32, #tpu.memory_space<vmem>>, vector<64x32xf32>
    %cst_8 = arith.constant dense<0.000000e+00> : vector<8x32xf32>
    %9 = tpu.matmul %7, %8, %cst_8 {dimension_numbers = #tpu.dot_dimension_numbers<[1], [0], [0], [1], [0, 0, 1, 1], [], []>} : vector<8x64xf32>, vector<64x32xf32>, vector<8x32xf32> -> vector<8x32xf32>
    %c0_i32 = arith.constant 0 : i32
    %10 = arith.cmpi eq, %arg1, %c0_i32 : i32
    %11 = arith.extui %10 : i1 to i32
    %c0_i32_9 = arith.constant 0 : i32
    %12 = arith.cmpi ne, %11, %c0_i32_9 : i32
    scf.if %12 {
      %c0_14 = arith.constant 0 : index
      %c0_15 = arith.constant 0 : index
      %19 = vector.load %arg10[%c0_14, %c0_15] : memref<8x32xf32, #tpu.memory_space<vmem>>, vector<8x32xf32>
      tpu.vector_store %arg10[%c0_14, %c0_15], %9 {strides = array<i32>} : memref<8x32xf32, #tpu.memory_space<vmem>>, vector<8x32xf32>,
    } else {
    }
    %c0_i32_10 = arith.constant 0 : i32
    %13 = arith.cmpi sgt, %arg1, %c0_i32_10 : i32
    %14 = arith.extui %13 : i1 to i32
    %c0_i32_11 = arith.constant 0 : i32
    %15 = arith.cmpi ne, %14, %c0_i32_11 : i32
    scf.if %15 {
      %c0_14 = arith.constant 0 : index
      %c0_15 = arith.constant 0 : index
      %19 = vector.load %arg10[%c0_14, %c0_15] : memref<8x32xf32, #tpu.memory_space<vmem>>, vector<8x32xf32>
      %20 = arith.addf %19, %9 : vector<8x32xf32>
      %c0_16 = arith.constant 0 : index
      %c0_17 = arith.constant 0 : index
      %21 = vector.load %arg10[%c0_16, %c0_17] : memref<8x32xf32, #tpu.memory_space<vmem>>, vector<8x32xf32>
      tpu.vector_store %arg10[%c0_16, %c0_17], %20 {strides = array<i32>} : memref<8x32xf32, #tpu.memory_space<vmem>>, vector<8x32xf32>,
    } else {
    }
    %c0_i32_12 = arith.constant 0 : i32
    %16 = arith.cmpi eq, %arg1, %c0_i32_12 : i32
    %17 = arith.extui %16 : i1 to i32
    %c0_i32_13 = arith.constant 0 : i32
    %18 = arith.cmpi ne, %17, %c0_i32_13 : i32
    scf.if %18 {
      %c0_14 = arith.constant 0 : index
      %c0_15 = arith.constant 0 : index
      %19 = vector.load %arg10[%c0_14, %c0_15] : memref<8x32xf32, #tpu.memory_space<vmem>>, vector<8x32xf32>
      %c0_16 = arith.constant 0 : index
      %c0_17 = arith.constant 0 : index
      %20 = vector.load %arg6[%c0_16, %c0_17] : memref<1x32xf32, #tpu.memory_space<vmem>>, vector<1x32xf32>
      %21 = vector.broadcast %20 : vector<1x32xf32> to vector<8x32xf32>
      %22 = arith.addf %19, %21 : vector<8x32xf32>
      %c0_18 = arith.constant 0 : index
      %c0_19 = arith.constant 0 : index
      %23 = vector.load %arg2[%c0_18, %c0_19] : memref<8x32xf32, #tpu.memory_space<vmem>>, vector<8x32xf32>
      %24 = arith.addf %22, %23 : vector<8x32xf32>
      %cst_20 = arith.constant dense<0.000000e+00> : vector<8xf32>
      %25 = vector.multi_reduction <add>, %24, %cst_20 [1] : vector<8x32xf32> to vector<8xf32>
      %26 = vector.shape_cast %25 : vector<8xf32> to vector<8x1xf32>
      %cst_21 = arith.constant 3.200000e+01 : f32
      %27 = vector.broadcast %cst_21 : f32 to vector<8x1xf32>
      %28 = arith.divf %26, %27 : vector<8x1xf32>
      %29 = vector.broadcast %28 : vector<8x1xf32> to vector<8x32xf32>
      %30 = arith.subf %24, %29 : vector<8x32xf32>
      %31 = arith.mulf %30, %30 : vector<8x32xf32>
      %cst_22 = arith.constant dense<0.000000e+00> : vector<8xf32>
      %32 = vector.multi_reduction <add>, %31, %cst_22 [1] : vector<8x32xf32> to vector<8xf32>
      %33 = vector.shape_cast %32 : vector<8xf32> to vector<8x1xf32>
      %cst_23 = arith.constant 3.200000e+01 : f32
      %34 = vector.broadcast %cst_23 : f32 to vector<8x1xf32>
      %35 = arith.divf %33, %34 : vector<8x1xf32>
      %cst_24 = arith.constant 9.99999974E-6 : f32
      %36 = vector.broadcast %cst_24 : f32 to vector<8x1xf32>
      %37 = arith.addf %35, %36 : vector<8x1xf32>
      %38 = math.rsqrt %37 : vector<8x1xf32>
      %39 = vector.broadcast %38 : vector<8x1xf32> to vector<8x32xf32>
      %40 = arith.mulf %30, %39 : vector<8x32xf32>
      %c0_25 = arith.constant 0 : index
      %c0_26 = arith.constant 0 : index
      %41 = vector.load %arg7[%c0_25, %c0_26] : memref<1x32xf32, #tpu.memory_space<vmem>>, vector<1x32xf32>
      %42 = vector.broadcast %41 : vector<1x32xf32> to vector<8x32xf32>
      %43 = arith.mulf %40, %42 : vector<8x32xf32>
      %c0_27 = arith.constant 0 : index
      %c0_28 = arith.constant 0 : index
      %44 = vector.load %arg8[%c0_27, %c0_28] : memref<1x32xf32, #tpu.memory_space<vmem>>, vector<1x32xf32>
      %45 = vector.broadcast %44 : vector<1x32xf32> to vector<8x32xf32>
      %46 = arith.addf %43, %45 : vector<8x32xf32>
      %c0_29 = arith.constant 0 : index
      %c0_30 = arith.constant 0 : index
      %47 = vector.load %arg9[%c0_29, %c0_30] : memref<8x32xf32, #tpu.memory_space<vmem>>, vector<8x32xf32>
      tpu.vector_store %arg9[%c0_29, %c0_30], %46 {strides = array<i32>} : memref<8x32xf32, #tpu.memory_space<vmem>>, vector<8x32xf32>,
    } else {
    }
    return
  }
  func.func @transform_0(%arg0: i32, %arg1: i32) -> (i32, i32) {
    %c0_i32 = arith.constant 0 : i32
    %c0_i32_0 = arith.constant 0 : i32
    return %arg0, %c0_i32 : i32, i32
  }
  func.func @transform_1(%arg0: i32, %arg1: i32) -> (i32, i32) {
    %c0_i32 = arith.constant 0 : i32
    %c0_i32_0 = arith.constant 0 : i32
    return %c0_i32, %arg1 : i32, i32
  }
  func.func @transform_2(%arg0: i32, %arg1: i32) -> (i32, i32) {
    %c0_i32 = arith.constant 0 : i32
    %c0_i32_0 = arith.constant 0 : i32
    return %c0_i32, %arg1 : i32, i32
  }
  func.func @transform_3(%arg0: i32, %arg1: i32) -> (i32, i32) {
    %c0_i32 = arith.constant 0 : i32
    %c0_i32_0 = arith.constant 0 : i32
    return %arg1, %c0_i32 : i32, i32
  }
  func.func @transform_4(%arg0: i32, %arg1: i32) -> (i32, i32) {
    %c0_i32 = arith.constant 0 : i32
    %c0_i32_0 = arith.constant 0 : i32
    %c0_i32_1 = arith.constant 0 : i32
    return %c0_i32, %c0_i32_0 : i32, i32
  }
  func.func @transform_5(%arg0: i32, %arg1: i32) -> (i32, i32) {
    %c0_i32 = arith.constant 0 : i32
    %c0_i32_0 = arith.constant 0 : i32
    %c0_i32_1 = arith.constant 0 : i32
    return %c0_i32, %c0_i32_0 : i32, i32
  }
  func.func @transform_6(%arg0: i32, %arg1: i32) -> (i32, i32) {
    %c0_i32 = arith.constant 0 : i32
    %c0_i32_0 = arith.constant 0 : i32
    %c0_i32_1 = arith.constant 0 : i32
    return %c0_i32, %c0_i32_0 : i32, i32
  }
  func.func @transform_7(%arg0: i32, %arg1: i32) -> (i32, i32) {
    %c0_i32 = arith.constant 0 : i32
    %c0_i32_0 = arith.constant 0 : i32
    return %arg0, %c0_i32 : i32, i32
  }
}

</mosaic_0001>

<bundles_post_ra>
// kernel: tpu_custom_call.1
= control target key start
LH: loop header
LB: loop body
LE: loop exit
PB: predicated region body
PF: predicated region fallthrough
CT: control target
= control target key end

     0   :  { %12 = vsyncpa [#allocation4], 0  ;;  %s944_s0 = inlined_call_operand.vmem [shape: f32[16,32], index: 0, kind: input, shape index: {}]   ;;  %s945_s1 = inlined_call_operand.vmem [shape: f32[32,64], index: 1, kind: input, shape index: {}]   ;;  %s946_s2 = inlined_call_operand.vmem [shape: f32[1,64], index: 2, kind: input, shape index: {}]   ;;  %s947_s3 = inlined_call_operand.vmem [shape: f32[64,32], index: 3, kind: input, shape index: {}]   ;;  %s948_s4 = inlined_call_operand.vmem [shape: f32[1,32], index: 4, kind: input, shape index: {}]   ;;  %s949_s5 = inlined_call_operand.vmem [shape: f32[1,32], index: 5, kind: input, shape index: {}]   ;;  %s950_s6 = inlined_call_operand.vmem [shape: f32[1,32], index: 6, kind: input, shape index: {}]   ;;  %s951_s7 = inlined_call_operand.hbm [shape: f32[16,32], index: 7, kind: output, shape index: {}]  }
   0x1   :  { %14 = vsyncpa [#allocation4 + $0x1], 0  ;;  %s794_s24 = smov 0   ;;  %s796_s25 = smov 0  }
   0x2   :  { %s798_s26 = smov 0   ;;  %s800_s27 = smov 0  }
   0x3   :  { %s802_s28 = smov 0   ;;  %s804_s29 = smov 0  }
   0x4 LB: > { %s593_s30 = sadd.s32 4294967295, %s751_s29   ;;  %s594_s8 = sadd.s32 4294967294, %s751_s29   ;;  %s751_s29 = sphi %s804_s29, %s20_s29   ;;  %s747_s28 = sphi %s802_s28, %s958_s28   ;;  %s743_s27 = sphi %s800_s27, %s957_s27   ;;  %s739_s26 = sphi %s798_s26, %s956_s26   ;;  %s735_s25 = sphi %s796_s25, %s955_s25   ;;  %s731_s24 = sphi %s794_s24, %s954_s24  }
   0x5   : > { %s32_s9 = sadd.s32 1, %s747_s28  ;;  %s206_s10 = sadd.s32 1, %s739_s26 }
   0x6   : > { %p34_p0 = scmp.ge.s32.totalorder %s32_s9, 2  ;;  %p216_p1 = scmp.ne.s32.totalorder %s739_s26, %s735_s25 }
   0x7   : > { %p217_p2 = scmp.eq.s32.totalorder %s593_s30, 1  ;;  %p222_p3 = scmp.ne.s32.totalorder %s735_s25, %s731_s24 }
   0x8   : > { %s960_s9 = smov (%p34_p0, %s32_s9), 0  ;;  %p223_p5 = scmp.eq.s32.totalorder %s594_s8, 1 }
   0x9   : > { %p834_p4 = por %p217_p2, %p216_p1  ;;  %s203_s12 = ssub.s32 %s747_s28, %s960_s9 }
   0xa   : > { %p600_p6 = scmp.ge.s32.totalorder %s751_s29, 1  ;;  %p204_p7 = scmp.eq.s32.totalorder %s203_s12, 0 }
   0xb   : > { %p841_p8 = por %p223_p5, %p222_p3  ;;  %p279_p9 = scmp.lt.s32.totalorder %s751_s29, 3 }
   0xc   : > { %s847_s14 = scalar_select %p204_p7, %s739_s26, %s206_s10  }
   0xd   : > { %p280_p10 = pnand %p600_p6, %p279_p9 }
   0xe   : > { %p322_p11 = scmp.lt.s32.totalorder (!%p280_p10), %s743_s27, 1  ;;  %s319_s22 = sand.u32 (!%p280_p10), 1, %s735_s25  }
   0xf   : > { %283 = sbr.rel (%p280_p10) target bundleno = 567 (0x237), region = 48  ;;  %s601_s23 = sshll.u32 (!%p280_p10), %s319_s22, 3 }
  0x10   : > { %s606_s30 = sshll.u32 (!%p280_p10), %s743_s27, 3  ;;  %s321_s19 = scalar_lea.vmem (!%p280_p10), [#allocation3], %s601_s23 }
  0x11   : > { %s479_s16 = scalar_lea.hbm (!%p280_p10), %s951_s7, %s606_s30  ;;  %s469_s21 = scalar_lea.sflag (!%p280_p10), [#allocation4], %s319_s22 }
  0x12   : > { %s693_s23 = scalar_lea.hbm (!%p280_p10), %s951_s7, 16 }
  0x14   : > { %v343_v0 = vld [vmem:[%s945_s1 + $0x18] sm:$0xff]  ;;  %v342_v1 = vld [vmem:[%s945_s1 + $0x10] sm:$0xff]  ;;  %v341_v4 = vld [vmem:[%s945_s1 + $0x8] sm:$0xff]  ;;  %s323_s8 = scalar_select %p322_p11, %s743_s27, 1  ;;  %vm348_vm0 = vcmask 261120   ;;  %vm381_vm1 = vcmask 523264  }
  0x15   : > { %364 = vmatpush.msra.mxu0 %v343_v0  ;;  %v380_v2 = vld [vmem:[%s947_s3 + $0x38] sm:$0xff]  ;;  %v379_v3 = vld [vmem:[%s947_s3 + $0x30] sm:$0xff]  ;;  %v378_v5 = vld [vmem:[%s947_s3 + $0x28] sm:$0xff]  ;;  %v753_v23 = vmov 32.0   ;;  %s481_s27 = sshll.u32 %s321_s19, 4  ;;  %s482_s27 = int_to_ptr.vmem [resolvable:$true] %s481_s27 }
  0x16   : > { %393 = vmatpush.msra.mxu1 %v380_v2  ;;  %v340_v6 = vld [vmem:[%s945_s1] sm:$0xff]  ;;  %s602_s17 = sshll.u32 %s323_s8, 3  ;;  %v376_v9 = vld [vmem:[%s947_s3 + $0x18] sm:$0xff]  ;;  %v375_v10 = vld [vmem:[%s947_s3 + $0x10] sm:$0xff]  ;;  %669 = vrcp.f32 %v753_v23 }
  0x17   : > { %365 = vmatpush.msra.mxu0 %v342_v1  ;;  %s325_s20 = scalar_lea.vmem %s944_s0, %s602_s17  ;;  %v377_v7 = vld [vmem:[%s947_s3 + $0x20] sm:$0xff]  ;;  %v374_v11 = vld [vmem:[%s947_s3 + $0x8] sm:$0xff] }
  0x18   : > { %394 = vmatpush.msra.mxu1 %v379_v3  ;;  %v339_v8 = vld [vmem:[%s325_s20] sm:$0xff]  ;;  %s483_s20 = sshll.u32 %s479_s16, 4  ;;  %s484_s20 = int_to_ptr.hbm [resolvable:$true] %s483_s20 }
  0x19   : > { %366 = vmatpush.msra.mxu0 %v341_v4  ;;  %v373_v12 = vld [vmem:[%s947_s3] sm:$0xff]  ;;  %s687_s8 = sshra.s32 %s484_s20, 4  ;;  %s688_s8 = int_to_ptr.hbm [resolvable:$true] %s687_s8 }
  0x1a   : > { %395 = vmatpush.msra.mxu1 %v378_v5  ;;  %v665_v13 = vld [vmem:[%s946_s2] ss:$0 sm:$0xff]  ;;  %s689_s30 = scalar_lea.hbm %s688_s8, 8  ;;  %p694_p1 = scmp.lt.s32.totalorder %s688_s8, %s951_s7 }
  0x1b   : > { %367 = vmatpush.msra.mxu0 %v340_v6  ;;  %v666_v18 = vld [vmem:[%s948_s4] ss:$0 sm:$0xff]  ;;  %p690_p12 = scmp.ne.s32.totalorder %s688_s8, %s689_s30  ;;  %p695_p2 = scmp.lt.s32.totalorder %s693_s23, %s689_s30 }
  0x1c   : > { %603 = vmatmul.msk.f32.vlgmr.msra.gmra.mxu0 %vm348_vm0, %v339_v8  ;;  %396 = vmatpush.msra.mxu1 %v377_v7  ;;  %v670_v24 = vpop.eup %669  ;;  %v667_v44 = vld [vmem:[%s949_s5] ss:$0 sm:$0xff] }
  0x1d   : > { %v432_v25 = vmul.f32 32.0, %v670_v24  ;;  %vm436_vm2 = vweird.f32 %v670_v24  ;;  %v668_v47 = vld [vmem:[%s950_s6] ss:$0 sm:$0xff]  ;;  %p691_p13 = pnand %p690_p12, %p834_p4  ;;  %p696_p3 = por %p695_p2, %p694_p1 }
  0x1e   : > { %397 = vmatpush.msra.mxu1 %v376_v9 }
  0x1f   : > { %v433_v26 = vsub.f32 1.0, %v432_v25  ;;  %p692_p0 = pneg %p691_p13 }
  0x20   : > { %398 = vmatpush.msra.mxu1 %v375_v10 }
  0x21   : > { %v434_v27 = vmul.f32 %v670_v24, %v433_v26  ;;  %p697_p5 = pnand %p696_p3, %p692_p0 }
  0x22   : > { %399 = vmatpush.msra.mxu1 %v374_v11 }
  0x23   : > { %v435_v28 = vadd.f32 %v670_v24, %v434_v27 }
  0x24   : > { %400 = vmatpush.msra.mxu1 %v373_v12 }
  0x25   : > { %v437_v29 = vsel %vm436_vm2, %v670_v24, %v435_v28 }
  0x99   : > { %v369_v14 = vpop.f32.mrf.mxu0 }
  0x9a   : > { %v370_v15 = vadd.f32 %v665_v13, %v369_v14 }
  0x9c   : > { %v372_v16 = vmax.f32 %v370_v15, 0.0 }
  0x9e   : > { %604 = vmatmul.msk.f32.vlgmr.msra.gmra.mxu1 %vm381_vm1, %v372_v16 }
 0x11b   : > { %v402_v17 = vpop.f32.mrf.mxu1 }
 0x11c   : > { %409 = vst.msk [vmem:[#allocation2] sm:$0xff] %vm348_vm0, %v402_v17 }
 0x123   : > { %v420_v19 = vld [vmem:[#allocation2] sm:$0xff] }
 0x124   : > { %v425_v20 = vadd.f32 %v666_v18, %v420_v19 }
 0x126   : > { %v427_v21 = vadd.f32 %v425_v20, %v339_v8 }
 0x128   : > { %v428_v22 = vsel %vm348_vm0, %v427_v21, 0.0 }
 0x129   : > { %429 = vadd.xlane.f32.xlu0 %v428_v22 }
 0x19c   : > { %v430_v30 = vpop.xlane.xlu0 %429 }
 0x19d   : > { %v438_v31 = vmul.f32 %v437_v29, %v430_v30 }
 0x19f   : > { %v439_v32 = vsub.f32 %v427_v21, %v438_v31 }
 0x1a1   : > { %v440_v33 = vmul.f32 %v439_v32, %v439_v32 }
 0x1a3   : > { %v441_v34 = vsel %vm348_vm0, %v440_v33, 0.0 }
 0x1a4   : > { %442 = vadd.xlane.f32.xlu0 %v441_v34 }
 0x217   : > { %v443_v35 = vpop.xlane.xlu0 %442 }
 0x218   : > { %v444_v36 = vmul.f32 %v443_v35, %v437_v29 }
 0x21a   : > { %v445_v37 = vadd.f32 1e-05, %v444_v36 }
 0x21c   : > { %671 = vrsqrt.f32 %v445_v37  ;;  %vm452_vm4 = vweird.f32 %v445_v37 }
 0x222   : > { %v672_v38 = vpop.eup %671 }
 0x223   : > { %v447_v39 = vmul.f32 %v672_v38, %v445_v37  ;;  %vm453_vm3 = vweird.f32 %v672_v38 }
 0x224   : > { %vm454_vm5 = vmor %vm452_vm4, %vm453_vm3 }
 0x225   : > { %v448_v40 = vmul.f32 %v672_v38, %v447_v39 }
 0x227   : > { %v449_v41 = vmul.f32 0.5, %v448_v40 }
 0x229   : > { %v450_v42 = vsub.f32 1.5, %v449_v41 }
 0x22b   : > { %v451_v43 = vmul.f32 %v672_v38, %v450_v42 }
 0x22d   : > { %v455_v45 = vsel %vm454_vm5, %v672_v38, %v451_v43 }
 0x22e   : > { %v456_v46 = vmul.f32 %v455_v45, %v439_v32 }
 0x230   : > { %v461_v48 = vmul.f32 %v667_v44, %v456_v46 }
 0x232   : > { %v466_v49 = vadd.f32 %v668_v47, %v461_v48 }
 0x234   : > { %467 = vst.msk [vmem:[%s321_s19] sm:$0xff] %vm348_vm0, %v466_v49 }
 0x235   : > { %700 = shalt.err (!%p697_p5)
}
 0x236   : > { %609 = dma.vmem_to_hbm [thread:$0]  (%p834_p4), %s482_s27, 128, %s484_s20, %s469_s21  }
 0x237 PF: > { %p615_p6 = scmp.ge.s32.totalorder %s751_s29, 2  ;;  %s495_s22 = sand.u32 1, %s731_s24  }
 0x238   : > { %s496_s17 = scalar_lea.sflag [#allocation4], %s495_s22 }
 0x239   : > { %p612_p7 = pnand %p615_p6, %p841_p8 }
 0x23b   : > { %p613_p9 = pneg %p612_p7 }
 0x23d   : > { %726 = dma.done.wait (%p613_p9), %s496_s17, 128  }
 0x23e   : > { %728 = vsyncadd (%p613_p9), %s496_s17, 4294967168  ;;  %s20_s29 = sadd.s32 1, %s751_s29   ;;  %s954_s24 = smov %s735_s25 }
 0x23f   : > { %p17_p10 = scmp.ge.s32.totalorder %s20_s29, 4   ;;  %s955_s25 = smov %s739_s26 }
 0x240   : > { %s956_s26 = smov %s847_s14  ;;  %s957_s27 = smov %s747_s28 }
 0x241   : > { %s958_s28 = smov %s960_s9  ;;  %19 = sbr.rel (!%p17_p10) target bundleno = 4 (0x4), region = 104 }
 0x246   :  { %502 = vsyncpa [#allocation4], 1 }
 0x247   :  { %504 = vsyncpa [#allocation4 + $0x1], 1 }

</bundles_post_ra>
